<compile_context>
chip_gen: v6e
topology: v6e:2x2x1
jax: 0.10.0
libtpu: 0.0.40
codegen_flags: <defaults>
</compile_context>

<pallas_src>
import math

import jax
import jax.numpy as jnp
from jax.experimental import pallas as pl
from jax.experimental.pallas import tpu as pltpu


def _enc_dec_attn_kernel(x_ref, enc_ref, mask_ref,
                         wq_ref, bq_ref, wk_ref, bk_ref, wv_ref, bv_ref,
                         wp_ref, bp_ref,
                         o_ref, acc_ref):
    h = pl.program_id(2)

    @pl.when(h == 0)
    def _():
        acc_ref[...] = jnp.zeros_like(acc_ref)

    x = x_ref[0]        # (TQ,  n_state)
    enc = enc_ref[0]    # (T_k, n_state)

    # Per-head projections (weight slices streamed along the head grid axis).
    q = jnp.dot(x,   wq_ref[0], preferred_element_type=jnp.float32) + bq_ref[0]   # (TQ,  d)
    k = jnp.dot(enc, wk_ref[0], preferred_element_type=jnp.float32) + bk_ref[0]   # (T_k, d)
    v = jnp.dot(enc, wv_ref[0], preferred_element_type=jnp.float32) + bv_ref[0]   # (T_k, d)

    d_head = q.shape[-1]
    # scores = q @ k^T  (contract last dims; no explicit transpose needed)
    s = jax.lax.dot_general(q, k, (((1,), (1,)), ((), ())),
                            preferred_element_type=jnp.float32)                   # (TQ, T_k)
    s = s * (1.0 / math.sqrt(d_head))
    s = jnp.where(mask_ref[0] > 0, jnp.float32(-10000.0), s)

    # softmax over keys
    s = s - jnp.max(s, axis=-1, keepdims=True)
    e = jnp.exp(s)
    p = e / jnp.sum(e, axis=-1, keepdims=True)
    # TODO(synk): attn_dropout(p=0.2) is identity in eval mode; training-mode
    # dropout would use pltpu.prng_seed + pltpu.stateful_bernoulli.

    a = jnp.dot(p.astype(v.dtype), v, preferred_element_type=jnp.float32)         # (TQ, d)

    # Accumulate this head's slice of the output projection into VMEM scratch.
    acc_ref[...] += jnp.dot(a, wp_ref[0], preferred_element_type=jnp.float32)     # (TQ, n_state)

    @pl.when(h == pl.num_programs(2) - 1)
    def _():
        o_ref[0] = (acc_ref[...] + bp_ref[...]).astype(o_ref.dtype)


def enc_dec_attention_pallas(x, encoder_output, mask, params, *, n_head):
    """x: [B, T_q, n_state]; encoder_output: [B, T_k, n_state];
    mask: [B, T_q, T_k] (nonzero / True => fill with -10000) or None."""
    wq, bq, wk, bk, wv, bv, wp, bp = params
    B, T_q, n_state = x.shape
    _, T_k, _ = encoder_output.shape
    n_emb = wq.shape[0]
    assert n_emb % n_head == 0
    d_head = n_emb // n_head
    assert n_emb == n_state, "merge_heads output dim must match c_proj input dim"

    # Query-tile size: 128 when it divides T_q (lane/sublane friendly, pipelined),
    # otherwise the full extent (small shapes).
    TQ = 128 if (T_q % 128 == 0) else T_q
    n_q_tiles = T_q // TQ

    # nn.Linear weights are [out, in]; pre-transpose once and split per head so
    # each weight block's last-two dims are full extents regardless of d_head.
    def split_lin(w):  # [n_emb, n_state] -> [n_head, n_state, d_head]
        return jnp.transpose(w, (1, 0)).reshape(n_state, n_head, d_head).transpose(1, 0, 2)

    wq_h = split_lin(wq)
    wk_h = split_lin(wk)
    wv_h = split_lin(wv)
    bq_h = bq.reshape(n_head, 1, d_head)
    bk_h = bk.reshape(n_head, 1, d_head)
    bv_h = bv.reshape(n_head, 1, d_head)
    # Conv1D_ (GPT-2 convention): weight [n_state, n_state], out = a @ W + b.
    wp_h = wp.reshape(n_head, d_head, n_state)
    bp_2d = bp.reshape(1, n_state)

    if mask is None:
        mask_f = jnp.zeros((B, T_q, T_k), dtype=jnp.float32)
    else:
        mask_f = jnp.broadcast_to(mask, (B, T_q, T_k)).astype(jnp.float32)

    out = pl.pallas_call(
        _enc_dec_attn_kernel,
        out_shape=jax.ShapeDtypeStruct((B, T_q, n_state), x.dtype),
        grid=(B, n_q_tiles, n_head),
        in_specs=[
            pl.BlockSpec((1, TQ, n_state),      lambda b, qi, h: (b, qi, 0)),  # x
            pl.BlockSpec((1, T_k, n_state),     lambda b, qi, h: (b, 0, 0)),   # encoder_output
            pl.BlockSpec((1, TQ, T_k),          lambda b, qi, h: (b, qi, 0)),  # mask
            pl.BlockSpec((1, n_state, d_head),  lambda b, qi, h: (h, 0, 0)),   # Wq (per head)
            pl.BlockSpec((1, 1, d_head),        lambda b, qi, h: (h, 0, 0)),   # bq
            pl.BlockSpec((1, n_state, d_head),  lambda b, qi, h: (h, 0, 0)),   # Wk
            pl.BlockSpec((1, 1, d_head),        lambda b, qi, h: (h, 0, 0)),   # bk
            pl.BlockSpec((1, n_state, d_head),  lambda b, qi, h: (h, 0, 0)),   # Wv
            pl.BlockSpec((1, 1, d_head),        lambda b, qi, h: (h, 0, 0)),   # bv
            pl.BlockSpec((1, d_head, n_state),  lambda b, qi, h: (h, 0, 0)),   # W_proj (per head)
            pl.BlockSpec((1, n_state),          lambda b, qi, h: (0, 0)),      # b_proj
        ],
        out_specs=pl.BlockSpec((1, TQ, n_state), lambda b, qi, h: (b, qi, 0)),
        scratch_shapes=[pltpu.VMEM((TQ, n_state), jnp.float32)],
        compiler_params=pltpu.CompilerParams(
            dimension_semantics=("parallel", "parallel", "arbitrary"),
            vmem_limit_bytes=48 * 1024 * 1024,
        ),
    )(x, encoder_output, mask_f,
      wq_h, bq_h, wk_h, bk_h, wv_h, bv_h, wp_h, bp_2d)
    return out


def enc_dec_attention_reference(x, encoder_output, mask, params, *, n_head):
    wq, bq, wk, bk, wv, bv, wp, bp = params
    B, T_q, n_state = x.shape
    T_k = encoder_output.shape[1]
    n_emb = wq.shape[0]
    d = n_emb // n_head

    q = jnp.einsum("bts,os->bto", x, wq) + bq
    k = jnp.einsum("bts,os->bto", encoder_output, wk) + bk
    v = jnp.einsum("bts,os->bto", encoder_output, wv) + bv

    qh = q.reshape(B, T_q, n_head, d).transpose(0, 2, 1, 3)   # [B,H,Tq,d]
    kh = k.reshape(B, T_k, n_head, d).transpose(0, 2, 3, 1)   # [B,H,d,Tk]
    vh = v.reshape(B, T_k, n_head, d).transpose(0, 2, 1, 3)   # [B,H,Tk,d]

    w = jnp.einsum("bhqd,bhdk->bhqk", qh, kh) / math.sqrt(d)
    if mask is not None:
        w = jnp.where(mask[:, None, :, :] != 0, -10000.0, w)
    w = jax.nn.softmax(w, axis=-1)
    a = jnp.einsum("bhqk,bhkd->bhqd", w, vh)
    a = a.transpose(0, 2, 1, 3).reshape(B, T_q, n_emb)
    return jnp.einsum("bts,so->bto", a, wp) + bp


if __name__ == "__main__":
    B = 2
    T_q = 8        # decoder (query) length
    T_k = 16       # encoder (key/value) length
    n_state = 128  # model width (== n_emb in the module)
    n_emb = 128
    n_head = 4     # d_head = 32

    key = jax.random.PRNGKey(0)
    ks = jax.random.split(key, 10)

    x = jax.random.normal(ks[0], (B, T_q, n_state), dtype=jnp.float32)
    enc = jax.random.normal(ks[1], (B, T_k, n_state), dtype=jnp.float32)

    scale = 1.0 / math.sqrt(n_state)
    wq = scale * jax.random.normal(ks[2], (n_emb, n_state), dtype=jnp.float32)
    wk = scale * jax.random.normal(ks[3], (n_emb, n_state), dtype=jnp.float32)
    wv = scale * jax.random.normal(ks[4], (n_emb, n_state), dtype=jnp.float32)
    bq = 0.02 * jax.random.normal(ks[5], (n_emb,), dtype=jnp.float32)
    bk = 0.02 * jax.random.normal(ks[6], (n_emb,), dtype=jnp.float32)
    bv = 0.02 * jax.random.normal(ks[7], (n_emb,), dtype=jnp.float32)
    wp = scale * jax.random.normal(ks[8], (n_state, n_state), dtype=jnp.float32)
    bp = 0.02 * jax.random.normal(ks[9], (n_state,), dtype=jnp.float32)

    # Encoder padding mask: mask out the tail of the encoder sequence per batch.
    valid_len = jnp.array([T_k, T_k - 5], dtype=jnp.int32)
    key_pos = jax.lax.broadcasted_iota(jnp.int32, (B, T_q, T_k), 2)
    mask = key_pos >= valid_len[:, None, None]   # True => masked with -10000

    params = (wq, bq, wk, bk, wv, bv, wp, bp)

    out = enc_dec_attention_pallas(x, enc, mask, params, n_head=n_head)
    out = jax.block_until_ready(out)

    ref = enc_dec_attention_reference(x, enc, mask, params, n_head=n_head)
    assert out.shape == (B, T_q, n_state)
    assert jnp.allclose(out, ref, atol=1e-3, rtol=1e-3), (
        f"mismatch vs reference: max abs err {jnp.max(jnp.abs(out - ref))}")
    print("KERNEL_OK")
</pallas_src>

<mosaic_0001>
module attributes {stable_mosaic.version = 11 : i64} {
  func.func @_enc_dec_attn_kernel(%arg0: i32, %arg1: i32, %arg2: i32, %arg3: memref<1x8x128xf32, #tpu.memory_space<vmem>>, %arg4: memref<1x16x128xf32, #tpu.memory_space<vmem>>, %arg5: memref<1x8x16xf32, #tpu.memory_space<vmem>>, %arg6: memref<1x128x32xf32, #tpu.memory_space<vmem>>, %arg7: memref<1x1x32xf32, #tpu.memory_space<vmem>>, %arg8: memref<1x128x32xf32, #tpu.memory_space<vmem>>, %arg9: memref<1x1x32xf32, #tpu.memory_space<vmem>>, %arg10: memref<1x128x32xf32, #tpu.memory_space<vmem>>, %arg11: memref<1x1x32xf32, #tpu.memory_space<vmem>>, %arg12: memref<1x32x128xf32, #tpu.memory_space<vmem>>, %arg13: memref<1x128xf32, #tpu.memory_space<vmem>>, %arg14: memref<1x8x128xf32, #tpu.memory_space<vmem>>, %arg15: memref<8x128xf32, #tpu.memory_space<vmem>>) attributes {dimension_semantics = [#tpu.dimension_semantics<parallel>, #tpu.dimension_semantics<parallel>, #tpu.dimension_semantics<arbitrary>], iteration_bounds = array<i64: 2, 1, 4>, scalar_prefetch = 0 : i64, scratch_operands = 1 : i64, tpu.core_type = #tpu.core_type<tc>, window_params = [{transform_indices = @transform_0, window_bounds = array<i64: 1, 8, 128>}, {transform_indices = @transform_1, window_bounds = array<i64: 1, 16, 128>}, {transform_indices = @transform_2, window_bounds = array<i64: 1, 8, 16>}, {transform_indices = @transform_3, window_bounds = array<i64: 1, 128, 32>}, {transform_indices = @transform_4, window_bounds = array<i64: 1, 1, 32>}, {transform_indices = @transform_5, window_bounds = array<i64: 1, 128, 32>}, {transform_indices = @transform_6, window_bounds = array<i64: 1, 1, 32>}, {transform_indices = @transform_7, window_bounds = array<i64: 1, 128, 32>}, {transform_indices = @transform_8, window_bounds = array<i64: 1, 1, 32>}, {transform_indices = @transform_9, window_bounds = array<i64: 1, 32, 128>}, {pipeline_mode = #tpu.pipeline_mode<synchronous>, transform_indices = @transform_10, window_bounds = array<i64: 1, 128>}, {transform_indices = @transform_11, window_bounds = array<i64: 1, 8, 128>}]} {
    %c0_i32 = arith.constant 0 : i32
    %0 = arith.cmpi eq, %arg2, %c0_i32 : i32
    %1 = arith.extui %0 : i1 to i32
    %c0_i32_0 = arith.constant 0 : i32
    %2 = arith.cmpi ne, %1, %c0_i32_0 : i32
    scf.if %2 {
      %cst_45 = arith.constant 0.000000e+00 : f32
      %56 = vector.broadcast %cst_45 : f32 to vector<8x128xf32>
      %c0_46 = arith.constant 0 : index
      %c0_47 = arith.constant 0 : index
      %57 = vector.load %arg15[%c0_46, %c0_47] : memref<8x128xf32, #tpu.memory_space<vmem>>, vector<8x128xf32>
      tpu.vector_store %arg15[%c0_46, %c0_47], %56 {strides = array<i32>} : memref<8x128xf32, #tpu.memory_space<vmem>>, vector<8x128xf32>,
    } else {
    }
    %c0 = arith.constant 0 : index
    %c0_1 = arith.constant 0 : index
    %c0_2 = arith.constant 0 : index
    %3 = vector.load %arg3[%c0, %c0_1, %c0_2] : memref<1x8x128xf32, #tpu.memory_space<vmem>>, vector<1x8x128xf32>
    %4 = vector.shape_cast %3 : vector<1x8x128xf32> to vector<8x128xf32>
    %c0_3 = arith.constant 0 : index
    %c0_4 = arith.constant 0 : index
    %c0_5 = arith.constant 0 : index
    %5 = vector.load %arg4[%c0_3, %c0_4, %c0_5] : memref<1x16x128xf32, #tpu.memory_space<vmem>>, vector<1x16x128xf32>
    %6 = vector.shape_cast %5 : vector<1x16x128xf32> to vector<16x128xf32>
    %c0_6 = arith.constant 0 : index
    %c0_7 = arith.constant 0 : index
    %c0_8 = arith.constant 0 : index
    %7 = vector.load %arg6[%c0_6, %c0_7, %c0_8] : memref<1x128x32xf32, #tpu.memory_space<vmem>>, vector<1x128x32xf32>
    %8 = vector.shape_cast %7 : vector<1x128x32xf32> to vector<128x32xf32>
    %cst = arith.constant dense<0.000000e+00> : vector<8x32xf32>
    %9 = tpu.matmul %4, %8, %cst {dimension_numbers = #tpu.dot_dimension_numbers<[1], [0], [0], [1], [0, 0, 1, 1], [], []>} : vector<8x128xf32>, vector<128x32xf32>, vector<8x32xf32> -> vector<8x32xf32>
    %c0_9 = arith.constant 0 : index
    %c0_10 = arith.constant 0 : index
    %c0_11 = arith.constant 0 : index
    %10 = vector.load %arg7[%c0_9, %c0_10, %c0_11] : memref<1x1x32xf32, #tpu.memory_space<vmem>>, vector<1x1x32xf32>
    %11 = vector.shape_cast %10 : vector<1x1x32xf32> to vector<1x32xf32>
    %12 = vector.broadcast %11 : vector<1x32xf32> to vector<8x32xf32>
    %13 = arith.addf %9, %12 : vector<8x32xf32>
    %c0_12 = arith.constant 0 : index
    %c0_13 = arith.constant 0 : index
    %c0_14 = arith.constant 0 : index
    %14 = vector.load %arg8[%c0_12, %c0_13, %c0_14] : memref<1x128x32xf32, #tpu.memory_space<vmem>>, vector<1x128x32xf32>
    %15 = vector.shape_cast %14 : vector<1x128x32xf32> to vector<128x32xf32>
    %cst_15 = arith.constant dense<0.000000e+00> : vector<16x32xf32>
    %16 = tpu.matmul %6, %15, %cst_15 {dimension_numbers = #tpu.dot_dimension_numbers<[1], [0], [0], [1], [0, 0, 1, 1], [], []>} : vector<16x128xf32>, vector<128x32xf32>, vector<16x32xf32> -> vector<16x32xf32>
    %c0_16 = arith.constant 0 : index
    %c0_17 = arith.constant 0 : index
    %c0_18 = arith.constant 0 : index
    %17 = vector.load %arg9[%c0_16, %c0_17, %c0_18] : memref<1x1x32xf32, #tpu.memory_space<vmem>>, vector<1x1x32xf32>
    %18 = vector.shape_cast %17 : vector<1x1x32xf32> to vector<1x32xf32>
    %19 = vector.broadcast %18 : vector<1x32xf32> to vector<16x32xf32>
    %20 = arith.addf %16, %19 : vector<16x32xf32>
    %c0_19 = arith.constant 0 : index
    %c0_20 = arith.constant 0 : index
    %c0_21 = arith.constant 0 : index
    %21 = vector.load %arg10[%c0_19, %c0_20, %c0_21] : memref<1x128x32xf32, #tpu.memory_space<vmem>>, vector<1x128x32xf32>
    %22 = vector.shape_cast %21 : vector<1x128x32xf32> to vector<128x32xf32>
    %cst_22 = arith.constant dense<0.000000e+00> : vector<16x32xf32>
    %23 = tpu.matmul %6, %22, %cst_22 {dimension_numbers = #tpu.dot_dimension_numbers<[1], [0], [0], [1], [0, 0, 1, 1], [], []>} : vector<16x128xf32>, vector<128x32xf32>, vector<16x32xf32> -> vector<16x32xf32>
    %c0_23 = arith.constant 0 : index
    %c0_24 = arith.constant 0 : index
    %c0_25 = arith.constant 0 : index
    %24 = vector.load %arg11[%c0_23, %c0_24, %c0_25] : memref<1x1x32xf32, #tpu.memory_space<vmem>>, vector<1x1x32xf32>
    %25 = vector.shape_cast %24 : vector<1x1x32xf32> to vector<1x32xf32>
    %26 = vector.broadcast %25 : vector<1x32xf32> to vector<16x32xf32>
    %27 = arith.addf %23, %26 : vector<16x32xf32>
    %cst_26 = arith.constant dense<0.000000e+00> : vector<8x16xf32>
    %28 = tpu.matmul %13, %20, %cst_26 {dimension_numbers = #tpu.dot_dimension_numbers<[1], [1], [0], [0], [0, 0, 1, 0], [], []>} : vector<8x32xf32>, vector<16x32xf32>, vector<8x16xf32> -> vector<8x16xf32>
    %cst_27 = arith.constant 0.176776692 : f32
    %29 = vector.broadcast %cst_27 : f32 to vector<8x16xf32>
    %30 = arith.mulf %28, %29 : vector<8x16xf32>
    %c0_28 = arith.constant 0 : index
    %c0_29 = arith.constant 0 : index
    %c0_30 = arith.constant 0 : index
    %31 = vector.load %arg5[%c0_28, %c0_29, %c0_30] : memref<1x8x16xf32, #tpu.memory_space<vmem>>, vector<1x8x16xf32>
    %32 = vector.shape_cast %31 : vector<1x8x16xf32> to vector<8x16xf32>
    %cst_31 = arith.constant 0.000000e+00 : f32
    %33 = vector.broadcast %cst_31 : f32 to vector<8x16xf32>
    %34 = arith.cmpf ogt, %32, %33 : vector<8x16xf32>
    %cst_32 = arith.constant -1.000000e+04 : f32
    %35 = vector.broadcast %cst_32 : f32 to vector<8x16xf32>
    %36 = arith.select %34, %35, %30 : vector<8x16xi1>, vector<8x16xf32>
    %cst_33 = arith.constant dense<0xFF800000> : vector<8xf32>
    %37 = vector.multi_reduction <maximumf>, %36, %cst_33 [1] : vector<8x16xf32> to vector<8xf32>
    %38 = vector.shape_cast %37 : vector<8xf32> to vector<8x1xf32>
    %39 = vector.broadcast %38 : vector<8x1xf32> to vector<8x16xf32>
    %40 = arith.subf %36, %39 : vector<8x16xf32>
    %41 = math.exp %40 : vector<8x16xf32>
    %cst_34 = arith.constant dense<0.000000e+00> : vector<8xf32>
    %42 = vector.multi_reduction <add>, %41, %cst_34 [1] : vector<8x16xf32> to vector<8xf32>
    %43 = vector.shape_cast %42 : vector<8xf32> to vector<8x1xf32>
    %44 = vector.broadcast %43 : vector<8x1xf32> to vector<8x16xf32>
    %45 = arith.divf %41, %44 : vector<8x16xf32>
    %cst_35 = arith.constant dense<0.000000e+00> : vector<8x32xf32>
    %46 = tpu.matmul %45, %27, %cst_35 {dimension_numbers = #tpu.dot_dimension_numbers<[1], [0], [0], [1], [0, 0, 1, 1], [], []>} : vector<8x16xf32>, vector<16x32xf32>, vector<8x32xf32> -> vector<8x32xf32>
    %c0_36 = arith.constant 0 : index
    %c0_37 = arith.constant 0 : index
    %47 = vector.load %arg15[%c0_36, %c0_37] : memref<8x128xf32, #tpu.memory_space<vmem>>, vector<8x128xf32>
    %c0_38 = arith.constant 0 : index
    %c0_39 = arith.constant 0 : index
    %c0_40 = arith.constant 0 : index
    %48 = vector.load %arg12[%c0_38, %c0_39, %c0_40] : memref<1x32x128xf32, #tpu.memory_space<vmem>>, vector<1x32x128xf32>
    %49 = vector.shape_cast %48 : vector<1x32x128xf32> to vector<32x128xf32>
    %cst_41 = arith.constant dense<0.000000e+00> : vector<8x128xf32>
    %50 = tpu.matmul %46, %49, %cst_41 {dimension_numbers = #tpu.dot_dimension_numbers<[1], [0], [0], [1], [0, 0, 1, 1], [], []>} : vector<8x32xf32>, vector<32x128xf32>, vector<8x128xf32> -> vector<8x128xf32>
    %51 = arith.addf %47, %50 : vector<8x128xf32>
    %c0_42 = arith.constant 0 : index
    %c0_43 = arith.constant 0 : index
    %52 = vector.load %arg15[%c0_42, %c0_43] : memref<8x128xf32, #tpu.memory_space<vmem>>, vector<8x128xf32>
    tpu.vector_store %arg15[%c0_42, %c0_43], %51 {strides = array<i32>} : memref<8x128xf32, #tpu.memory_space<vmem>>, vector<8x128xf32>,
    %c3_i32 = arith.constant 3 : i32
    %53 = arith.cmpi eq, %arg2, %c3_i32 : i32
    %54 = arith.extui %53 : i1 to i32
    %c0_i32_44 = arith.constant 0 : i32
    %55 = arith.cmpi ne, %54, %c0_i32_44 : i32
    scf.if %55 {
      %c0_45 = arith.constant 0 : index
      %c0_46 = arith.constant 0 : index
      %56 = vector.load %arg15[%c0_45, %c0_46] : memref<8x128xf32, #tpu.memory_space<vmem>>, vector<8x128xf32>
      %c0_47 = arith.constant 0 : index
      %c0_48 = arith.constant 0 : index
      %57 = vector.load %arg13[%c0_47, %c0_48] : memref<1x128xf32, #tpu.memory_space<vmem>>, vector<1x128xf32>
      %58 = vector.broadcast %57 : vector<1x128xf32> to vector<8x128xf32>
      %59 = arith.addf %56, %58 : vector<8x128xf32>
      %c0_49 = arith.constant 0 : index
      %c0_50 = arith.constant 0 : index
      %c0_51 = arith.constant 0 : index
      %60 = vector.load %arg14[%c0_49, %c0_50, %c0_51] : memref<1x8x128xf32, #tpu.memory_space<vmem>>, vector<1x8x128xf32>
      %61 = vector.shape_cast %60 : vector<1x8x128xf32> to vector<8x128xf32>
      %62 = vector.shape_cast %59 : vector<8x128xf32> to vector<1x8x128xf32>
      tpu.vector_store %arg14[%c0_49, %c0_50, %c0_51], %62 {strides = array<i32>} : memref<1x8x128xf32, #tpu.memory_space<vmem>>, vector<1x8x128xf32>,
    } else {
    }
    return
  }
  func.func @transform_0(%arg0: i32, %arg1: i32, %arg2: i32) -> (i32, i32, i32) {
    %c0_i32 = arith.constant 0 : i32
    %c0_i32_0 = arith.constant 0 : i32
    return %arg0, %arg1, %c0_i32 : i32, i32, i32
  }
  func.func @transform_1(%arg0: i32, %arg1: i32, %arg2: i32) -> (i32, i32, i32) {
    %c0_i32 = arith.constant 0 : i32
    %c0_i32_0 = arith.constant 0 : i32
    %c0_i32_1 = arith.constant 0 : i32
    return %arg0, %c0_i32, %c0_i32_0 : i32, i32, i32
  }
  func.func @transform_2(%arg0: i32, %arg1: i32, %arg2: i32) -> (i32, i32, i32) {
    %c0_i32 = arith.constant 0 : i32
    %c0_i32_0 = arith.constant 0 : i32
    return %arg0, %arg1, %c0_i32 : i32, i32, i32
  }
  func.func @transform_3(%arg0: i32, %arg1: i32, %arg2: i32) -> (i32, i32, i32) {
    %c0_i32 = arith.constant 0 : i32
    %c0_i32_0 = arith.constant 0 : i32
    %c0_i32_1 = arith.constant 0 : i32
    return %arg2, %c0_i32, %c0_i32_0 : i32, i32, i32
  }
  func.func @transform_4(%arg0: i32, %arg1: i32, %arg2: i32) -> (i32, i32, i32) {
    %c0_i32 = arith.constant 0 : i32
    %c0_i32_0 = arith.constant 0 : i32
    %c0_i32_1 = arith.constant 0 : i32
    return %arg2, %c0_i32, %c0_i32_0 : i32, i32, i32
  }
  func.func @transform_5(%arg0: i32, %arg1: i32, %arg2: i32) -> (i32, i32, i32) {
    %c0_i32 = arith.constant 0 : i32
    %c0_i32_0 = arith.constant 0 : i32
    %c0_i32_1 = arith.constant 0 : i32
    return %arg2, %c0_i32, %c0_i32_0 : i32, i32, i32
  }
  func.func @transform_6(%arg0: i32, %arg1: i32, %arg2: i32) -> (i32, i32, i32) {
    %c0_i32 = arith.constant 0 : i32
    %c0_i32_0 = arith.constant 0 : i32
    %c0_i32_1 = arith.constant 0 : i32
    return %arg2, %c0_i32, %c0_i32_0 : i32, i32, i32
  }
  func.func @transform_7(%arg0: i32, %arg1: i32, %arg2: i32) -> (i32, i32, i32) {
    %c0_i32 = arith.constant 0 : i32
    %c0_i32_0 = arith.constant 0 : i32
    %c0_i32_1 = arith.constant 0 : i32
    return %arg2, %c0_i32, %c0_i32_0 : i32, i32, i32
  }
  func.func @transform_8(%arg0: i32, %arg1: i32, %arg2: i32) -> (i32, i32, i32) {
    %c0_i32 = arith.constant 0 : i32
    %c0_i32_0 = arith.constant 0 : i32
    %c0_i32_1 = arith.constant 0 : i32
    return %arg2, %c0_i32, %c0_i32_0 : i32, i32, i32
  }
  func.func @transform_9(%arg0: i32, %arg1: i32, %arg2: i32) -> (i32, i32, i32) {
    %c0_i32 = arith.constant 0 : i32
    %c0_i32_0 = arith.constant 0 : i32
    %c0_i32_1 = arith.constant 0 : i32
    return %arg2, %c0_i32, %c0_i32_0 : i32, i32, i32
  }
  func.func @transform_10(%arg0: i32, %arg1: i32, %arg2: i32) -> (i32, i32) {
    %c0_i32 = arith.constant 0 : i32
    %c0_i32_0 = arith.constant 0 : i32
    %c0_i32_1 = arith.constant 0 : i32
    return %c0_i32, %c0_i32_0 : i32, i32
  }
  func.func @transform_11(%arg0: i32, %arg1: i32, %arg2: i32) -> (i32, i32, i32) {
    %c0_i32 = arith.constant 0 : i32
    %c0_i32_0 = arith.constant 0 : i32
    return %arg0, %arg1, %c0_i32 : i32, i32, i32
  }
}

</mosaic_0001>

<bundles_post_ra>
// kernel: tpu_custom_call.1
= control target key start
LH: loop header
LB: loop body
LE: loop exit
PB: predicated region body
PF: predicated region fallthrough
CT: control target
= control target key end

     0   :  { %s2105_s0 = inlined_call_operand.vmem [shape: f32[2,8,128], index: 0, kind: input, shape index: {}]   ;;  %s2106_s1 = inlined_call_operand.vmem [shape: f32[2,16,128], index: 1, kind: input, shape index: {}]   ;;  %s2107_s2 = inlined_call_operand.vmem [shape: f32[2,8,16], index: 2, kind: input, shape index: {}]   ;;  %s2108_s3 = inlined_call_operand.vmem [shape: f32[4,128,32], index: 3, kind: input, shape index: {}]   ;;  %s2109_s4 = inlined_call_operand.vmem [shape: f32[4,1,32], index: 4, kind: input, shape index: {}]   ;;  %s2110_s5 = inlined_call_operand.vmem [shape: f32[4,128,32], index: 5, kind: input, shape index: {}]   ;;  %s2111_s6 = inlined_call_operand.vmem [shape: f32[4,1,32], index: 6, kind: input, shape index: {}]   ;;  %s2112_s7 = inlined_call_operand.vmem [shape: f32[4,128,32], index: 7, kind: input, shape index: {}]   ;;  %s2113_s8 = inlined_call_operand.vmem [shape: f32[4,1,32], index: 8, kind: input, shape index: {}]   ;;  %s2114_s9 = inlined_call_operand.vmem [shape: f32[4,32,128], index: 9, kind: input, shape index: {}]   ;;  %s2115_s10 = inlined_call_operand.vmem [shape: f32[1,128], index: 10, kind: input, shape index: {}]   ;;  %s2116_s11 = inlined_call_operand.hbm [shape: f32[2,8,128], index: 11, kind: output, shape index: {}]  }
   0x1   :  { %2131 = sst [smem:[#allocation18_spill]] %s2105_s0 }
   0x2   :  { %2132 = sst [smem:[#allocation19_spill]] %s2106_s1 }
   0x3   :  { %2133 = sst [smem:[#allocation20_spill]] %s2107_s2 }
   0x4   :  { %2134 = sst [smem:[#allocation21_spill]] %s2116_s11 }
   0x5   :  { %16 = vsyncpa [#allocation4], 0 }
   0x6   :  { %18 = vsyncpa [#allocation4 + $0x1], 0  ;;  %s1806_s17 = smov 0   ;;  %s1808_s18 = smov 0  }
   0x7   :  { %s1810_s19 = smov 0   ;;  %s1812_s20 = smov 0  }
   0x8   :  { %s1814_s21 = smov 0   ;;  %s1816_s22 = smov 0  }
   0x9   :  { %s1818_s23 = smov 0   ;;  %s1820_s24 = smov 0  }
   0xa LB: > { %2135 = sst [smem:[#allocation6_spill]] %s1712_s17  ;;  %s1338_s25 = sadd.s32 4294967295, %s1740_s24   ;;  %s1740_s24 = sphi %s1820_s24, %s24_s24   ;;  %s1736_s23 = sphi %s1818_s23, %s2167_s23   ;;  %s1732_s22 = sphi %s1816_s22, %s2166_s22   ;;  %s1728_s21 = sphi %s1814_s21, %s2165_s21   ;;  %s1724_s20 = sphi %s1812_s20, %s2164_s20   ;;  %s1720_s19 = sphi %s1810_s19, %s2163_s19   ;;  %s1716_s18 = sphi %s1808_s18, %s2162_s18   ;;  %s1712_s17 = sphi %s1806_s17, %s2161_s17  }
   0xb   : > { %2136 = sst [smem:[#allocation7_spill]] %s1716_s18  ;;  %s1339_s26 = sadd.s32 4294967294, %s1740_s24  }
   0xc   : > { %2137 = sst [smem:[#allocation8_spill]] %s1720_s19  ;;  %s36_s27 = sadd.s32 1, %s1732_s22 }
   0xd   : > { %2138 = sst [smem:[#allocation9_spill]] %s1728_s21  ;;  %p37_p0 = scmp.ge.s32.totalorder %s36_s27, 4 }
   0xe   : > { %2139 = sst [smem:[#allocation10_spill]] %s1732_s22  ;;  %s43_s28 = sadd.s32 1, %s1736_s23 }
   0xf   : > { %2140 = sst [smem:[#allocation11_spill]] %s1736_s23  ;;  %p347_p1 = scmp.ne.s32.totalorder %s1720_s19, %s1716_s18 }
  0x10   : > { %2141 = sst [smem:[#allocation12_spill]] %s1740_s24  ;;  %p348_p2 = scmp.eq.s32.totalorder %s1338_s25, 7 }
  0x11   : > { %s2169_s27 = smov (%p37_p0, %s36_s27), 0  ;;  %s2171_s28 = smov (!%p37_p0, %s43_s28), %s1736_s23 }
  0x12   : > { %2142 = sst [smem:[#allocation13_spill]] %s2169_s27  ;;  %p1855_p3 = por %p348_p2, %p347_p1 }
  0x13   : > { %p353_p4 = scmp.ne.s32.totalorder %s1716_s18, %s1712_s17  ;;  %p45_p5 = scmp.ge.s32.totalorder %s2171_s28, 2 }
  0x14   : > { %s2143_s29 = scalar_select %p1855_p3, 1, 0 }
  0x15   : > { %p354_p6 = scmp.eq.s32.totalorder %s1339_s26, 7  ;;  %p1342_p7 = scmp.ge.s32.totalorder %s1740_s24, 1 }
  0x16   : > { %2144 = sst [smem:[#allocation14_spill]] %s2143_s29  ;;  %p453_p8 = scmp.lt.s32.totalorder %s1740_s24, 9 }
  0x17   : > { %s2173_s28 = smov (%p45_p5, %s2171_s28), 0  ;;  %p1865_p9 = por %p354_p6, %p353_p4 }
  0x18   : > { %2145 = sst [smem:[#allocation15_spill]] %s2173_s28  ;;  %p454_p10 = pnand %p1342_p7, %p453_p8 }
  0x19   : > { %s2146_s30 = scalar_select %p1865_p9, 1, 0 }
  0x1a   : > { %s332_s12 = ssub.s32 %s1736_s23, %s2173_s28  ;;  %s337_s13 = sadd.s32 1, %s1720_s19 }
  0x1b   : > { %2147 = sst [smem:[#allocation16_spill]] %s2146_s30  ;;  %p335_p11 = scmp.eq.s32.totalorder %s332_s12, 0 }
  0x1c   : > { %457 = sbr.rel (%p454_p10) target bundleno = 1215 (0x4bf), region = 64  ;;  %s2120_s15 = sand.u32 (!%p454_p10), 1, %s1716_s18  }
  0x1d   : > { %s1873_s14 = scalar_select %p335_p11, %s1720_s19, %s337_s13  }
  0x1e   : > { %p536_p12 = scmp.lt.s32.totalorder (!%p454_p10), %s1728_s21, 1  ;;  %s1879_s16 = sshll.u32 (!%p454_p10), %s2120_s15, 3 }
  0x1f   : > { %2148 = sst [smem:[#allocation17_spill]] %s1873_s14  ;;  %p555_p13 = scmp.lt.s32.totalorder (!%p454_p10), %s1724_s20, 3 }
  0x20   : > { %s2149_s0 = sld [smem:[#allocation18_spill]] (!%p454_p10)  ;;  %p1356_p0 = scmp.ne.s32.totalorder (!%p454_p10), %s1724_s20, 0 }
  0x21   : > { %s537_s25 = scalar_select %p536_p12, %s1728_s21, 1 }
  0x22   : > { %s1884_s26 = scalar_select %p555_p13, %s1724_s20, 3 }
  0x23   : > { %s1344_s12 = sshll.u32 %s537_s25, 3  ;;  %s1371_s13 = sshll.u32 %s537_s25, 4 }
  0x24   : > { %s2150_s1 = sld [smem:[#allocation19_spill]]  ;;  %s1372_s24 = sshll.u32 %s1884_s26, 7 }
  0x25   : > { %s2151_s2 = sld [smem:[#allocation20_spill]]  ;;  %s1905_s25 = scalar_lea.vmem %s2108_s3, %s1372_s24 }
  0x26   : > { %s1889_s23 = scalar_lea.vmem %s2149_s0, %s1344_s12  ;;  %s1914_s22 = scalar_lea.vmem %s2110_s5, %s1372_s24 }
  0x27   : > { %s570_s19 = scalar_lea.vmem %s2111_s6, %s1884_s26  ;;  %s1375_s18 = sshll.u32 %s1884_s26, 5 }
  0x28   : > { %s1933_s0 = scalar_lea.vmem %s2114_s9, %s1375_s18  ;;  %s535_s21 = scalar_lea.vmem [#allocation3], %s1879_s16 }
  0x29   : > { %587 = sbr.rel (%p1356_p0) target bundleno = 48 (0x30), region = 68 }
  0x2a   : > { %s1894_s14 = scalar_lea.vmem %s2150_s1, %s1371_s13  ;;  %s1923_s1 = scalar_lea.vmem %s2112_s7, %s1372_s24 }
  0x2b   : > { %s1899_s17 = scalar_lea.vmem %s2151_s2, %s1344_s12  ;;  %s578_s2 = scalar_lea.vmem %s2113_s8, %s1884_s26 }
  0x2e   : > { %v1742_v0 = vmov 0.0  }
  0x2f   : > { %588 = vst [vmem:[#allocation2] sm:$0xff] %v1742_v0 }
  0x30 PF: > { %v700_v1 = vld [vmem:[%s1914_s22 + $0x78] sm:$0xff]  ;;  %v699_v2 = vld [vmem:[%s1914_s22 + $0x70] sm:$0xff]  ;;  %v1743_v3 = vmov 0.0   ;;  %v698_v6 = vld [vmem:[%s1914_s22 + $0x68] sm:$0xff]  ;;  %vm1744_vm0 = vmmov 0   ;;  %vm881_vm1 = vcmask 261120   ;;  %s2152_s28 = scalar_lea.vmem %s2109_s4, %s1884_s26 }
  0x31   : > { %1475 = vmatprep.subr.mxu1 %v700_v1  ;;  %1440 = vmatprep.subr.mxu0 %v1743_v3  ;;  %v607_v4 = vld [vmem:[%s1905_s25 + $0x78] sm:$0xff]  ;;  %v606_v5 = vld [vmem:[%s1905_s25 + $0x70] sm:$0xff]  ;;  %v605_v7 = vld [vmem:[%s1905_s25 + $0x68] sm:$0xff]  ;;  %vm965_vm3 = vcmask 130048   ;;  %p1365_p1 = scmp.ne.s32.totalorder %s1724_s20, 3 }
  0x32   : > { %1476 = vmatpush3.msra.mxu1 %v700_v1  ;;  %1441 = vmatpush3.msra.mxu0 %v607_v4  ;;  %v697_v8 = vld [vmem:[%s1914_s22 + $0x60] sm:$0xff]  ;;  %v696_v10 = vld [vmem:[%s1914_s22 + $0x58] sm:$0xff]  ;;  %v695_v12 = vld [vmem:[%s1914_s22 + $0x50] sm:$0xff] }
  0x33   : > { %1477 = vmatprep.subr.mxu1 %v699_v2  ;;  %1442 = vmatprep.subr.mxu0 %v1743_v3  ;;  %v604_v9 = vld [vmem:[%s1905_s25 + $0x60] sm:$0xff]  ;;  %v603_v11 = vld [vmem:[%s1905_s25 + $0x58] sm:$0xff]  ;;  %v602_v13 = vld [vmem:[%s1905_s25 + $0x50] sm:$0xff] }
  0x34   : > { %1478 = vmatpush3.msra.mxu1 %v699_v2  ;;  %1443 = vmatpush3.msra.mxu0 %v606_v5  ;;  %v694_v14 = vld [vmem:[%s1914_s22 + $0x48] sm:$0xff]  ;;  %v693_v16 = vld [vmem:[%s1914_s22 + $0x40] sm:$0xff]  ;;  %v692_v18 = vld [vmem:[%s1914_s22 + $0x38] sm:$0xff] }
  0x35   : > { %1479 = vmatprep.subr.mxu1 %v698_v6  ;;  %1444 = vmatprep.subr.mxu0 %v1743_v3  ;;  %v601_v15 = vld [vmem:[%s1905_s25 + $0x48] sm:$0xff]  ;;  %v600_v17 = vld [vmem:[%s1905_s25 + $0x40] sm:$0xff]  ;;  %v599_v19 = vld [vmem:[%s1905_s25 + $0x38] sm:$0xff] }
  0x36   : > { %1480 = vmatpush3.msra.mxu1 %v698_v6  ;;  %1445 = vmatpush3.msra.mxu0 %v605_v7  ;;  %v691_v20 = vld [vmem:[%s1914_s22 + $0x30] sm:$0xff]  ;;  %v690_v22 = vld [vmem:[%s1914_s22 + $0x28] sm:$0xff]  ;;  %v689_v24 = vld [vmem:[%s1914_s22 + $0x20] sm:$0xff] }
  0x37   : > { %1481 = vmatprep.subr.mxu1 %v697_v8  ;;  %1446 = vmatprep.subr.mxu0 %v1743_v3  ;;  %v598_v21 = vld [vmem:[%s1905_s25 + $0x30] sm:$0xff]  ;;  %v597_v23 = vld [vmem:[%s1905_s25 + $0x28] sm:$0xff]  ;;  %v596_v25 = vld [vmem:[%s1905_s25 + $0x20] sm:$0xff] }
  0x38   : > { %1482 = vmatpush3.msra.mxu1 %v697_v8  ;;  %1447 = vmatpush3.msra.mxu0 %v604_v9  ;;  %v688_v26 = vld [vmem:[%s1914_s22 + $0x18] sm:$0xff]  ;;  %v687_v28 = vld [vmem:[%s1914_s22 + $0x10] sm:$0xff]  ;;  %v590_v29 = vld [vmem:[%s1894_s14] sm:$0xff] }
  0x39   : > { %1483 = vmatprep.subr.mxu1 %v696_v10  ;;  %1448 = vmatprep.subr.mxu0 %v1743_v3  ;;  %v595_v27 = vld [vmem:[%s1905_s25 + $0x18] sm:$0xff]  ;;  %v686_v30 = vld [vmem:[%s1914_s22 + $0x8] sm:$0xff]  ;;  %v594_v31 = vld [vmem:[%s1905_s25 + $0x10] sm:$0xff] }
  0x3a   : > { %1484 = vmatpush3.msra.mxu1 %v696_v10  ;;  %1449 = vmatpush3.msra.mxu0 %v603_v11  ;;  %v685_v32 = vld [vmem:[%s1914_s22] sm:$0xff]  ;;  %v593_v33 = vld [vmem:[%s1905_s25 + $0x8] sm:$0xff]  ;;  %v798_v46 = vld [vmem:[%s1923_s1 + $0x78] sm:$0xff] }
  0x3b   : > { %1485 = vmatprep.subr.mxu1 %v695_v12  ;;  %1450 = vmatprep.subr.mxu0 %v1743_v3  ;;  %v1984_v34 = vld [vmem:[%s1894_s14 + $0x8] sm:$0xff]  ;;  %v592_v35 = vld [vmem:[%s1905_s25] sm:$0xff]  ;;  %v797_v47 = vld [vmem:[%s1923_s1 + $0x70] sm:$0xff] }
  0x3c   : > { %1486 = vmatpush3.msra.mxu1 %v695_v12  ;;  %1451 = vmatpush3.msra.mxu0 %v602_v13  ;;  %v589_v36 = vld [vmem:[%s1889_s23] sm:$0xff]  ;;  %v796_v48 = vld [vmem:[%s1923_s1 + $0x68] sm:$0xff]  ;;  %v794_v50 = vld [vmem:[%s1923_s1 + $0x58] sm:$0xff] }
  0x3d   : > { %1487 = vmatprep.subr.mxu1 %v694_v14  ;;  %1452 = vmatprep.subr.mxu0 %v1743_v3  ;;  %v1358_v37 = vld [vmem:[%s570_s19] ss:$0 sm:$0xff]  ;;  %v793_v51 = vld [vmem:[%s1923_s1 + $0x50] sm:$0xff]  ;;  %v792_v52 = vld [vmem:[%s1923_s1 + $0x48] sm:$0xff] }
  0x3e   : > { %1488 = vmatpush3.msra.mxu1 %v694_v14  ;;  %1453 = vmatpush3.msra.mxu0 %v601_v15  ;;  %v1357_v42 = vld [vmem:[%s2152_s28] ss:$0 sm:$0xff]  ;;  %v790_v54 = vld [vmem:[%s1923_s1 + $0x38] sm:$0xff]  ;;  %v789_v55 = vld [vmem:[%s1923_s1 + $0x30] sm:$0xff] }
  0x3f   : > { %1489 = vmatprep.subr.mxu1 %v693_v16  ;;  %1454 = vmatprep.subr.mxu0 %v1743_v3  ;;  %v795_v49 = vld [vmem:[%s1923_s1 + $0x60] sm:$0xff]  ;;  %v788_v56 = vld [vmem:[%s1923_s1 + $0x28] sm:$0xff]  ;;  %v786_v58 = vld [vmem:[%s1923_s1 + $0x18] sm:$0xff] }
  0x40   : > { %1490 = vmatpush3.msra.mxu1 %v693_v16  ;;  %1455 = vmatpush3.msra.mxu0 %v600_v17  ;;  %v791_v53 = vld [vmem:[%s1923_s1 + $0x40] sm:$0xff]  ;;  %v785_v59 = vld [vmem:[%s1923_s1 + $0x10] sm:$0xff]  ;;  %v784_v60 = vld [vmem:[%s1923_s1 + $0x8] sm:$0xff] }
  0x41   : > { %1491 = vmatprep.subr.mxu1 %v692_v18  ;;  %1456 = vmatprep.subr.mxu0 %v1743_v3  ;;  %v787_v57 = vld [vmem:[%s1923_s1 + $0x20] sm:$0xff] }
  0x42   : > { %1492 = vmatpush3.msra.mxu1 %v692_v18  ;;  %1457 = vmatpush3.msra.mxu0 %v599_v19  ;;  %v783_v61 = vld [vmem:[%s1923_s1] sm:$0xff]  ;;  %v1054_v18 = vld [vmem:[%s1933_s0 + $0x18] sm:$0xff]  ;;  %v1053_v19 = vld [vmem:[%s1933_s0 + $0x10] sm:$0xff] }
  0x43   : > { %1493 = vmatprep.subr.mxu1 %v691_v20  ;;  %1458 = vmatprep.subr.mxu0 %v1743_v3  ;;  %v962_v62 = vld [vmem:[%s1899_s17] sm:$0xff] }
  0x44   : > { %1494 = vmatpush3.msra.mxu1 %v691_v20  ;;  %1459 = vmatpush3.msra.mxu0 %v598_v21  ;;  %vm963_vm2 = vcmp.gt.f32.partialorder %v962_v62, 0.0  ;;  %v1359_v11 = vld [vmem:[%s578_s2] ss:$0 sm:$0xff]  ;;  %v1052_v20 = vld [vmem:[%s1933_s0 + $0x8] sm:$0xff] }
  0x45   : > { %1495 = vmatprep.subr.mxu1 %v690_v22  ;;  %1460 = vmatprep.subr.mxu0 %v1743_v3  ;;  %v1051_v21 = vld [vmem:[%s1933_s0] sm:$0xff] }
  0x46   : > { %1496 = vmatpush3.msra.mxu1 %v690_v22  ;;  %1461 = vmatpush3.msra.mxu0 %v597_v23 }
  0x47   : > { %1497 = vmatprep.subr.mxu1 %v689_v24  ;;  %1462 = vmatprep.subr.mxu0 %v1743_v3 }
  0x48   : > { %1498 = vmatpush3.msra.mxu1 %v689_v24  ;;  %1463 = vmatpush3.msra.mxu0 %v596_v25  ;;  %v1050_v24 = vld [vmem:[#allocation2] sm:$0xff] }
  0x49   : > { %1499 = vmatprep.subr.mxu1 %v688_v26  ;;  %1464 = vmatprep.subr.mxu0 %v1743_v3 }
  0x4a   : > { %1500 = vmatpush3.msra.mxu1 %v688_v26  ;;  %1465 = vmatpush3.msra.mxu0 %v595_v27 }
  0x4b   : > { %1501 = vmatprep.subr.mxu1 %v687_v28  ;;  %1466 = vmatprep.subr.mxu0 %v1743_v3 }
  0x4c   : > { %1502 = vmatpush3.msra.mxu1 %v687_v28  ;;  %1507 = vmatprep.mubr.f32.mxu1 %v590_v29 }
  0x4d   : > { %1503 = vmatprep.subr.mxu1 %v686_v30  ;;  %1467 = vmatpush3.msra.mxu0 %v594_v31 }
  0x4e   : > { %1504 = vmatpush3.msra.mxu1 %v686_v30  ;;  %1468 = vmatprep.subr.mxu0 %v1743_v3 }
  0x4f   : > { %1505 = vmatprep.subr.mxu1 %v685_v32  ;;  %1469 = vmatpush3.msra.mxu0 %v593_v33 }
  0x50   : > { %1506 = vmatpush3.msra.mxu1 %v685_v32  ;;  %1470 = vmatprep.subr.mxu0 %v1743_v3 }
  0x51   : > { %1508 = vmatmul.mubr.f32.vlgmr.msra.gmra.mxu1 %v1984_v34  ;;  %1471 = vmatpush3.msra.mxu0 %v592_v35 }
  0x52   : > { %1472 = vmatprep.mubr.msk.f32.mxu0 %vm1744_vm0, %v1743_v3  ;;  %1545 = vmatprep.subr.mxu1 %v1743_v3 }
  0x53   : > { %1473 = vmatmul.mubr.f32.vlgmr.msra.gmra.mxu0 %v589_v36  ;;  %1549 = vmatprep.mubr.msk.f32.mxu1 %vm1744_vm0, %v1743_v3 }
  0x54   : > { %1542 = vmatprep.mubr.f32.mxu0 %v590_v29  ;;  %1510 = vmatprep.subr.mxu0 %v798_v46 }
  0x55   : > { %1511 = vmatpush3.msra.mxu0 %v798_v46 }
  0x56   : > { %1512 = vmatprep.subr.mxu0 %v797_v47 }
  0x57   : > { %1513 = vmatpush3.msra.mxu0 %v797_v47 }
  0x58   : > { %1514 = vmatprep.subr.mxu0 %v796_v48 }
  0x59   : > { %1515 = vmatpush3.msra.mxu0 %v796_v48 }
  0x5a   : > { %1516 = vmatprep.subr.mxu0 %v795_v49 }
  0x5b   : > { %1517 = vmatpush3.msra.mxu0 %v795_v49 }
  0x5c   : > { %1518 = vmatprep.subr.mxu0 %v794_v50 }
  0x5d   : > { %1519 = vmatpush3.msra.mxu0 %v794_v50 }
  0x5e   : > { %1520 = vmatprep.subr.mxu0 %v793_v51 }
  0x5f   : > { %1521 = vmatpush3.msra.mxu0 %v793_v51 }
  0x60   : > { %1522 = vmatprep.subr.mxu0 %v792_v52 }
  0x61   : > { %1523 = vmatpush3.msra.mxu0 %v792_v52 }
  0x62   : > { %1524 = vmatprep.subr.mxu0 %v791_v53 }
  0x63   : > { %1525 = vmatpush3.msra.mxu0 %v791_v53 }
  0x64   : > { %1526 = vmatprep.subr.mxu0 %v790_v54 }
  0x65   : > { %1527 = vmatpush3.msra.mxu0 %v790_v54 }
  0x66   : > { %1528 = vmatprep.subr.mxu0 %v789_v55 }
  0x67   : > { %1529 = vmatpush3.msra.mxu0 %v789_v55 }
  0x68   : > { %1530 = vmatprep.subr.mxu0 %v788_v56 }
  0x69   : > { %1531 = vmatpush3.msra.mxu0 %v788_v56 }
  0x6a   : > { %1532 = vmatprep.subr.mxu0 %v787_v57 }
  0x6b   : > { %1533 = vmatpush3.msra.mxu0 %v787_v57 }
  0x6c   : > { %1534 = vmatprep.subr.mxu0 %v786_v58 }
  0x6d   : > { %1535 = vmatpush3.msra.mxu0 %v786_v58 }
  0x6e   : > { %1536 = vmatprep.subr.mxu0 %v785_v59 }
  0x6f   : > { %1537 = vmatpush3.msra.mxu0 %v785_v59 }
  0x70   : > { %1538 = vmatprep.subr.mxu0 %v784_v60 }
  0x71   : > { %1539 = vmatpush3.msra.mxu0 %v784_v60 }
  0x72   : > { %1540 = vmatprep.subr.mxu0 %v783_v61 }
  0x73   : > { %1541 = vmatpush3.msra.mxu0 %v783_v61 }
  0x74   : > { %1543 = vmatmul.mubr.f32.vlgmr.msra.gmra.mxu0 %v1984_v34 }
 0x111   : > { %v1509_v38 = vpop.f32.mrf.mxu1 }
 0x112   : > { %v780_v39 = vadd.f32 %v1509_v38, %v1358_v37 }
 0x113   : > { %v774_v40 = vpop.f32.mrf.mxu1  ;;  %v681_v41 = vpop.f32.mrf.mxu0 }
 0x114   : > { %1546 = vmatpush3.xpose.msk.msra.mxu1 %vm881_vm1, %v780_v39  ;;  %v775_v44 = vadd.f32 %v1358_v37, %v774_v40  ;;  %v682_v45 = vadd.f32 %v1357_v42, %v681_v41 }
 0x115   : > { %1547 = vmatprep.subr.mxu1 %v1743_v3  ;;  %v1474_v43 = vpop.f32.mrf.mxu0 }
 0x118   : > { %1548 = vmatpush3.xpose.msk.msra.mxu1 %vm881_vm1, %v775_v44 }
 0x119   : > { %1552 = vmatprep.subr.mxu1 %v1743_v3 }
 0x11b   : > { %1550 = vmatmul.mubr.msk.f32.vlgmr.msra.gmra.mxu1 %vm881_vm1, %v682_v45 }
 0x11c   : > { %1556 = vmatprep.mubr.msk.f32.mxu1 %vm1744_vm0, %v1743_v3 }
 0x134   : > { %v1544_v10 = vpop.f32.mrf.mxu0 }
 0x135   : > { %v878_v12 = vadd.f32 %v1544_v10, %v1359_v11 }
 0x136   : > { %v872_v13 = vpop.f32.mrf.mxu0 }
 0x137   : > { %v873_v14 = vadd.f32 %v1359_v11, %v872_v13  ;;  %1553 = vmatpush3.msra.mxu1 %v878_v12 }
 0x138   : > { %1554 = vmatprep.subr.mxu1 %v1743_v3 }
 0x139   : > { %1555 = vmatpush3.msra.mxu1 %v873_v14 }
 0x13a   : > { %1559 = vmatprep.subr.mxu1 %v1743_v3 }
 0x1db   : > { %v957_v63 = vpop.f32.mrf.mxu1 }
 0x1dc   : > { %v961_v0 = vmul.f32 0.17677669, %v957_v63 }
 0x1dd   : > { %v1551_v1 = vpop.f32.mrf.mxu1 }
 0x1de   : > { %v964_v2 = vsel %vm963_vm2, -10000.0, %v961_v0 }
 0x1df   : > { %v966_v4 = vsel %vm965_vm3, %v964_v2, -inf }
 0x1e0   : > { %967 = vmax.xlane.f32.xlu0 %v966_v4 }
 0x269   : > { %v968_v5 = vpop.xlane.xlu0 %967 }
 0x26a   : > { %v969_v6 = vsub.f32 %v964_v2, %v968_v5 }
 0x26c   : > { %v970_v7 = vmul.f32 1.442695, %v969_v6 }
 0x26e   : > { %1644 = vpow2.f32 %v970_v7 }
 0x27b   : > { %v1645_v8 = vpop.eup %1644 }
 0x27c   : > { %v972_v9 = vsel %vm965_vm3, %v1645_v8, 0.0 }
 0x27d   : > { %973 = vadd.xlane.f32.xlu0 %v972_v9 }
 0x306   : > { %v974_v15 = vpop.xlane.xlu0 %973 }
 0x307   : > { %1646 = vrcp.f32 %v974_v15 }
 0x314   : > { %v1647_v16 = vpop.eup %1646 }
 0x315   : > { %v976_v17 = vmul.f32 %v1647_v16, %v1645_v8 }
 0x317   : > { %1557 = vmatmul.mubr.msk.f32.vlgmr.msra.gmra.mxu1 %vm965_vm3, %v976_v17 }
 0x318   : > { %1560 = vmatpush3.msra.mxu1 %v1054_v18  ;;  %1567 = vmatprep.mubr.msk.f32.mxu1 %vm1744_vm0, %v1743_v3 }
 0x319   : > { %1561 = vmatprep.subr.mxu1 %v1743_v3 }
 0x31a   : > { %1562 = vmatpush3.msra.mxu1 %v1053_v19 }
 0x31b   : > { %1563 = vmatprep.subr.mxu1 %v1743_v3 }
 0x31c   : > { %1564 = vmatpush3.msra.mxu1 %v1052_v20 }
 0x31d   : > { %1565 = vmatprep.subr.mxu1 %v1743_v3 }
 0x31e   : > { %1566 = vmatpush3.msra.mxu1 %v1051_v21 }
 0x3d7   : > { %v1046_v22 = vpop.f32.mrf.mxu1 }
 0x3d8   : > { %1568 = vmatmul.mubr.msk.f32.vlgmr.msra.gmra.mxu1 %vm881_vm1, %v1046_v22 }
 0x3d9   : > { %v1558_v23 = vpop.f32.mrf.mxu1 }
 0x497   : > { %1133 = sbr.rel (%p1365_p1) target bundleno = 1190 (0x4a6), region = 72 }
 0x498   : > { %v1124_v25 = vpop.f32.mrf.mxu1 }
 0x499   : > { %v1128_v26 = vadd.f32 %v1124_v25, %v1050_v24 }
 0x49a   : > { %v1569_v27 = vpop.f32.mrf.mxu1 }
 0x49b   : > { %1129 = vst [vmem:[#allocation2] sm:$0xff] %v1128_v26 }
 0x49c   : > { %v1366_v3 = vld [vmem:[%s2115_s10] ss:$0 sm:$0xff] }
 0x4a2   : > { %v1134_v28 = vld [vmem:[#allocation2] sm:$0xff] }
 0x4a3   : > { %v1142_v29 = vadd.f32 %v1366_v3, %v1134_v28 }
 0x4a5   : > { %1143 = vst [vmem:[%s535_s21] sm:$0xff] %v1142_v29 }
 0x4a6 PF: > { %s2153_s22 = sld [smem:[#allocation9_spill]]  ;;  %s1159_s29 = sshll.u32 %s535_s21, 4  ;;  %s1160_s29 = int_to_ptr.vmem [resolvable:$true] %s1159_s29 }
 0x4a7   : > { %s2154_s15 = sld [smem:[#allocation7_spill]]  ;;  %s1648_s0 = scalar_lea.vmem %s1160_s29, 128 }
 0x4a8   : > { %s2156_s11 = sld [smem:[#allocation21_spill]]  ;;  %p1649_p2 = scmp.ne.s32.totalorder %s1160_s29, %s1648_s0 }
 0x4a9   : > { %s1745_s24 = smov [#allocation3]  }
 0x4aa   : > { %p1650_p4 = pnand %p1649_p2, %p1855_p3  ;;  %s1652_s14 = sshll.u32 %s1745_s24, 4  ;;  %s1653_s14 = int_to_ptr.vmem [resolvable:$false] %s1652_s14 }
 0x4ab   : > { %s1654_s23 = scalar_lea.vmem %s1653_s14, 256  ;;  %p1655_p6 = scmp.lt.s32.totalorder %s1160_s29, %s1653_s14 }
 0x4ac   : > { %s1368_s19 = sshll.u32 %s2153_s22, 7  ;;  %p1651_p5 = pneg %p1650_p4 }
 0x4ad   : > { %s2157_s18 = sand.u32 1, %s2154_s15   ;;  %p1656_p7 = scmp.lt.s32.totalorder %s1654_s23, %s1648_s0 }
 0x4ae   : > { %s1157_s20 = scalar_lea.hbm %s2156_s11, %s1368_s19  ;;  %s1145_s27 = scalar_lea.sflag [#allocation4], %s2157_s18 }
 0x4af   : > { %p1657_p8 = por %p1656_p7, %p1655_p6 }
 0x4b1   : > { %p1658_p10 = pnand %p1657_p8, %p1651_p5 }
 0x4b3   : > { %1661 = shalt.err (!%p1658_p10)
}
 0x4b4   : > { %s1662_s25 = scalar_lea.hbm %s1157_s20, 128  ;;  %s1666_s28 = scalar_lea.hbm %s2156_s11, 256 }
 0x4b5   : > { %p1663_p11 = scmp.ne.s32.totalorder %s1157_s20, %s1662_s25  ;;  %p1667_p0 = scmp.lt.s32.totalorder %s1157_s20, %s2156_s11 }
 0x4b6   : > { %p1668_p1 = scmp.lt.s32.totalorder %s1666_s28, %s1662_s25 }
 0x4b7   : > { %p1664_p12 = pnand %p1663_p11, %p1855_p3 }
 0x4b8   : > { %p1669_p2 = por %p1668_p1, %p1667_p0 }
 0x4b9   : > { %p1665_p13 = pneg %p1664_p12 }
 0x4bb   : > { %p1670_p4 = pnand %p1669_p2, %p1665_p13 }
 0x4bd   : > { %1673 = shalt.err (!%p1670_p4)
}
 0x4be   : > { %1570 = dma.vmem_to_hbm [thread:$0]  (%p1855_p3), %s1160_s29, 128, %s1157_s20, %s1145_s27  }
 0x4bf PF: > { %s2158_s2 = sld [smem:[#allocation12_spill]] }
 0x4c0   : > { %s2159_s26 = sld [smem:[#allocation6_spill]] }
 0x4c5   : > { %p1576_p5 = scmp.ge.s32.totalorder %s2158_s2, 2 }
 0x4c6   : > { %s1171_s15 = sand.u32 1, %s2159_s26  }
 0x4c7   : > { %p1573_p6 = pnand %p1576_p5, %p1865_p9  ;;  %s1172_s19 = scalar_lea.sflag [#allocation4], %s1171_s15 }
 0x4c9   : > { %p1574_p7 = pneg %p1573_p6 }
 0x4cb   : > { %1707 = dma.done.wait (%p1574_p7), %s1172_s19, 128  }
 0x4cc   : > { %1709 = vsyncadd (%p1574_p7), %s1172_s19, 4294967168  ;;  %s24_s24 = sadd.s32 1, %s2158_s2   ;;  %s2161_s17 = sld [smem:[#allocation7_spill]] }
 0x4cd   : > { %p21_p8 = scmp.ge.s32.totalorder %s24_s24, 10   ;;  %s2162_s18 = sld [smem:[#allocation8_spill]] }
 0x4ce   : > { %s2163_s19 = sld [smem:[#allocation17_spill]] }
 0x4cf   : > { %s2164_s20 = sld [smem:[#allocation10_spill]]  ;;  %23 = sbr.rel (!%p21_p8) target bundleno = 10 (0xa), region = 134 }
 0x4d0   : > { %s2165_s21 = sld [smem:[#allocation11_spill]] }
 0x4d1   : > { %s2166_s22 = sld [smem:[#allocation13_spill]] }
 0x4d2   : > { %s2167_s23 = sld [smem:[#allocation15_spill]] }
 0x4d4   :  { %1177 = vsyncpa [#allocation4], 1 }
 0x4d5   :  { %1179 = vsyncpa [#allocation4 + $0x1], 1 }

</bundles_post_ra>
